<compile_context>
chip_gen: v6e
topology: v6e:2x2x1
jax: 0.10.0
libtpu: 0.0.40
codegen_flags: <defaults>
</compile_context>

<pallas_src>
import math

import jax
import jax.numpy as jnp
from jax.experimental import pallas as pl
from jax.experimental.pallas import tpu as pltpu

LN_EPS = 1e-12  # BERT-style LayerNorm epsilon


def gelu_tanh(x):
    # gelu (tanh approximation), used consistently in kernel and reference.
    c = 0.7978845608028654  # sqrt(2/pi)
    return 0.5 * x * (1.0 + jnp.tanh(c * (x + 0.044715 * x * x * x)))


def _layer_norm(x, gamma, beta, eps=LN_EPS):
    mu = jnp.mean(x, axis=-1, keepdims=True)
    var = jnp.mean(jnp.square(x - mu), axis=-1, keepdims=True)
    return (x - mu) * jax.lax.rsqrt(var + eps) * gamma + beta


# ----------------------------- Kernel A: fused QKV projection -----------------------------
def qkv_proj_kernel(x_ref, wqkv_ref, bqkv_ref, o_ref):
    # x: (S, H) f32 -> bf16 MXU operands, f32 accumulate, bf16 store (halves HBM traffic).
    x = x_ref[0].astype(jnp.bfloat16)
    qkv = jnp.dot(x, wqkv_ref[...], preferred_element_type=jnp.float32) + bqkv_ref[...]
    o_ref[0] = qkv.astype(o_ref.dtype)


# ------------- Kernel B: attention core + output dense + con1 + MLP + con2 ----------------
def make_layer_kernel(num_heads, head_size):
    del num_heads, head_size  # shapes come from the refs

    def kernel(x_ref, mask_ref, q_ref, k_ref, v_ref,
               wo_ref, bo_ref, g1_ref, be1_ref,
               w1_ref, bi1_ref, w2_ref, bi2_ref,
               g2_ref, be2_ref, o_ref):
        qh = q_ref[0]          # (nh, tq, hd) bf16, already scaled by 1/sqrt(hd)
        kh = k_ref[0]          # (nh, S,  hd) bf16
        vh = v_ref[0]          # (nh, S,  hd) bf16
        mask = mask_ref[0]     # (1, S) f32 additive mask (0 keep / -1e4 masked)

        # Head-batched score matmul on the MXU (single dot_general stream, no per-head unroll).
        scores = jnp.einsum("hqd,hkd->hqk", qh, kh,
                            preferred_element_type=jnp.float32)          # (nh, tq, S) f32
        scores = scores + mask                                           # broadcast over h, q

        # Softmax over keys in f32; reciprocal goes to the EUP slot instead of a VPU divide.
        m = jnp.max(scores, axis=-1, keepdims=True)
        p = jnp.exp(scores - m)
        denom = jnp.sum(p, axis=-1, keepdims=True)
        probs = p * pl.reciprocal(denom, approx=True)
        # attention dropout: eval mode -> identity.

        ctx = jnp.einsum("hqk,hkd->hqd", probs.astype(jnp.bfloat16), vh,
                         preferred_element_type=jnp.float32)             # (nh, tq, hd) f32

        # Output projection expressed as a head-batched matmul + head-sum; mathematically equal
        # to concat-heads @ Wo but needs no in-kernel transpose/concatenate.
        per_head = jnp.einsum("hqd,hdo->hqo", ctx.astype(jnp.bfloat16), wo_ref[...],
                              preferred_element_type=jnp.float32)        # (nh, tq, H)
        attn = jnp.sum(per_head, axis=0) + bo_ref[...]                   # (tq, H) f32

        # con1: residual + LayerNorm (dropout identity in eval).
        h1 = _layer_norm(x_ref[0] + attn, g1_ref[...], be1_ref[...])

        # MLP: dense1 -> gelu -> (dropout identity) -> dense2.
        inter = jnp.dot(h1.astype(jnp.bfloat16), w1_ref[...],
                        preferred_element_type=jnp.float32) + bi1_ref[...]
        inter = gelu_tanh(inter)
        mlp = jnp.dot(inter.astype(jnp.bfloat16), w2_ref[...],
                      preferred_element_type=jnp.float32) + bi2_ref[...]

        # con2: residual + LayerNorm.
        out = _layer_norm(h1 + mlp, g2_ref[...], be2_ref[...])
        o_ref[0] = out.astype(o_ref.dtype)

    return kernel


def tp_bert_layer(hidden_states, attention_mask, params, num_heads, head_size, q_tile=256):
    """hidden_states: [B, S, H] f32; attention_mask: [B, 1, 1, S] additive f32."""
    B, S, H = hidden_states.shape
    nh, hd = num_heads, head_size
    P = nh * hd
    inter_size = params["w1"].shape[0]            # torch layout (out=intermediate, in=H)
    scale = 1.0 / math.sqrt(hd)

    # --- glue: weight prep. torch (out,in) -> (in,out); fold 1/sqrt(hd) into Q; bf16 MXU operands.
    wqkv = jnp.concatenate(
        [params["wq"].T * scale, params["wk"].T, params["wv"].T], axis=1
    ).astype(jnp.bfloat16)                                              # (H, 3P)
    bqkv = jnp.concatenate(
        [params["bq"] * scale, params["bk"], params["bv"]]
    ).reshape(1, 3 * P).astype(jnp.float32)

    wo = params["wo"].T.reshape(nh, hd, H).astype(jnp.bfloat16)         # (nh, hd, H)
    bo = params["bo"].reshape(1, H).astype(jnp.float32)
    w1 = params["w1"].T.astype(jnp.bfloat16)                            # (H, I)
    bi1 = params["b1"].reshape(1, inter_size).astype(jnp.float32)
    w2 = params["w2"].T.astype(jnp.bfloat16)                            # (I, H)
    bi2 = params["b2"].reshape(1, H).astype(jnp.float32)
    g1 = params["ln1_g"].reshape(1, H).astype(jnp.float32)
    be1 = params["ln1_b"].reshape(1, H).astype(jnp.float32)
    g2 = params["ln2_g"].reshape(1, H).astype(jnp.float32)
    be2 = params["ln2_b"].reshape(1, H).astype(jnp.float32)
    mask = attention_mask.reshape(B, 1, S).astype(jnp.float32)

    # --- kernel A: fused QKV projection (one MXU pass with N = 3P), grid over batch ---
    const2 = lambda b: (0, 0)
    qkv = pl.pallas_call(
        qkv_proj_kernel,
        out_shape=jax.ShapeDtypeStruct((B, S, 3 * P), jnp.bfloat16),
        grid_spec=pltpu.PrefetchScalarGridSpec(
            num_scalar_prefetch=0,
            grid=(B,),
            in_specs=[
                pl.BlockSpec((1, S, H), lambda b: (b, 0, 0)),
                pl.BlockSpec((H, 3 * P), const2),
                pl.BlockSpec((1, 3 * P), const2),
            ],
            out_specs=pl.BlockSpec((1, S, 3 * P), lambda b: (b, 0, 0)),
        ),
        compiler_params=pltpu.CompilerParams(dimension_semantics=("parallel",)),
    )(hidden_states, wqkv, bqkv)

    # glue: split heads outside the kernels (plain XLA copy) -> (B, nh, S, hd) bf16 each.
    qkv_h = qkv.reshape(B, S, 3, nh, hd).transpose(2, 0, 3, 1, 4)
    q_h, k_h, v_h = qkv_h[0], qkv_h[1], qkv_h[2]

    # --- kernel B: attention core + dense + con1 + MLP + con2, tiled over (batch, query tile) ---
    if q_tile < S and S % q_tile == 0 and q_tile % 8 == 0:
        tq = q_tile
    else:
        tq = S
    nq = S // tq

    c3 = lambda b, qi: (0, 0, 0)
    c2 = lambda b, qi: (0, 0)
    kernel = make_layer_kernel(nh, hd)
    out = pl.pallas_call(
        kernel,
        out_shape=jax.ShapeDtypeStruct((B, S, H), hidden_states.dtype),
        grid_spec=pltpu.PrefetchScalarGridSpec(
            num_scalar_prefetch=0,
            grid=(B, nq),
            in_specs=[
                pl.BlockSpec((1, tq, H), lambda b, qi: (b, qi, 0)),          # residual x tile
                pl.BlockSpec((1, 1, S), lambda b, qi: (b, 0, 0)),            # additive mask
                pl.BlockSpec((1, nh, tq, hd), lambda b, qi: (b, 0, qi, 0)),  # Q tile (head-split)
                pl.BlockSpec((1, nh, S, hd), lambda b, qi: (b, 0, 0, 0)),    # K (full sequence)
                pl.BlockSpec((1, nh, S, hd), lambda b, qi: (b, 0, 0, 0)),    # V (full sequence)
                pl.BlockSpec((nh, hd, H), c3), pl.BlockSpec((1, H), c2),     # attention dense
                pl.BlockSpec((1, H), c2), pl.BlockSpec((1, H), c2),          # LN1 gamma / beta
                pl.BlockSpec((H, inter_size), c2), pl.BlockSpec((1, inter_size), c2),  # MLP dense1
                pl.BlockSpec((inter_size, H), c2), pl.BlockSpec((1, H), c2),           # MLP dense2
                pl.BlockSpec((1, H), c2), pl.BlockSpec((1, H), c2),          # LN2 gamma / beta
            ],
            out_specs=pl.BlockSpec((1, tq, H), lambda b, qi: (b, qi, 0)),
        ),
        compiler_params=pltpu.CompilerParams(
            dimension_semantics=("parallel", "parallel")),
    )(hidden_states, mask, q_h, k_h, v_h, wo, bo, g1, be1, w1, bi1, w2, bi2, g2, be2)
    return out


# ----------------------------- pure-JAX reference (f32) -----------------------------------
def reference_layer(x, attn_mask, params, num_heads, head_size):
    B, S, H = x.shape
    P = num_heads * head_size
    q = x @ params["wq"].T + params["bq"]
    k = x @ params["wk"].T + params["bk"]
    v = x @ params["wv"].T + params["bv"]

    def split(t):
        return t.reshape(B, S, num_heads, head_size).transpose(0, 2, 1, 3)

    qh, kh, vh = split(q), split(k), split(v)
    scores = jnp.einsum("bhqd,bhkd->bhqk", qh, kh) / math.sqrt(head_size)
    scores = scores + attn_mask
    probs = jax.nn.softmax(scores, axis=-1)
    ctx = jnp.einsum("bhqk,bhkd->bhqd", probs, vh)
    ctx = ctx.transpose(0, 2, 1, 3).reshape(B, S, P)
    attn_out = ctx @ params["wo"].T + params["bo"]

    def ln(t, g, b):
        mu = t.mean(-1, keepdims=True)
        var = ((t - mu) ** 2).mean(-1, keepdims=True)
        return (t - mu) / jnp.sqrt(var + LN_EPS) * g + b

    h1 = ln(x + attn_out, params["ln1_g"], params["ln1_b"])
    inter = gelu_tanh(h1 @ params["w1"].T + params["b1"])
    mlp_out = inter @ params["w2"].T + params["b2"]
    return ln(h1 + mlp_out, params["ln2_g"], params["ln2_b"])


if __name__ == "__main__":
    # Small config: hidden=32, tp heads=4, head size=8, tp_intermediate_size=128.
    B, S, H = 2, 8, 32
    NH, HD = 4, 8
    P = NH * HD
    INTER = 128

    key = jax.random.PRNGKey(0)
    ks = jax.random.split(key, 20)
    s = 0.02
    params = {
        "wq": s * jax.random.normal(ks[0], (P, H), jnp.float32),
        "bq": s * jax.random.normal(ks[1], (P,), jnp.float32),
        "wk": s * jax.random.normal(ks[2], (P, H), jnp.float32),
        "bk": s * jax.random.normal(ks[3], (P,), jnp.float32),
        "wv": s * jax.random.normal(ks[4], (P, H), jnp.float32),
        "bv": s * jax.random.normal(ks[5], (P,), jnp.float32),
        "wo": s * jax.random.normal(ks[6], (H, P), jnp.float32),
        "bo": s * jax.random.normal(ks[7], (H,), jnp.float32),
        "w1": s * jax.random.normal(ks[8], (INTER, H), jnp.float32),
        "b1": s * jax.random.normal(ks[9], (INTER,), jnp.float32),
        "w2": s * jax.random.normal(ks[10], (H, INTER), jnp.float32),
        "b2": s * jax.random.normal(ks[11], (H,), jnp.float32),
        "ln1_g": 1.0 + s * jax.random.normal(ks[12], (H,), jnp.float32),
        "ln1_b": s * jax.random.normal(ks[13], (H,), jnp.float32),
        "ln2_g": 1.0 + s * jax.random.normal(ks[14], (H,), jnp.float32),
        "ln2_b": s * jax.random.normal(ks[15], (H,), jnp.float32),
    }

    hidden_states = jax.random.normal(ks[16], (B, S, H), jnp.float32)

    # BERT additive mask: batch 0 has all 8 tokens valid, batch 1 has 5.
    valid_lens = jnp.array([8, 5])
    token_valid = (jnp.arange(S)[None, :] < valid_lens[:, None]).astype(jnp.float32)
    attention_mask = (1.0 - token_valid)[:, None, None, :] * -10000.0    # [B,1,1,S]

    out = tp_bert_layer(hidden_states, attention_mask, params, NH, HD)
    out = jax.block_until_ready(out)

    ref = reference_layer(hidden_states, attention_mask, params, NH, HD)
    assert out.shape == (B, S, H)
    # bf16 MXU operands with f32 accumulation -> compare against f32 reference at bf16 tolerance.
    assert jnp.allclose(out, ref, atol=2e-2, rtol=2e-2), "mismatch vs reference"

    print("KERNEL_OK")
</pallas_src>

<mosaic_0001>
module attributes {stable_mosaic.version = 11 : i64} {
  func.func @qkv_proj_kernel(%arg0: i32, %arg1: memref<1x8x32xf32, #tpu.memory_space<vmem>>, %arg2: memref<32x96xbf16, #tpu.memory_space<vmem>>, %arg3: memref<1x96xf32, #tpu.memory_space<vmem>>, %arg4: memref<1x8x96xbf16, #tpu.memory_space<vmem>>) attributes {dimension_semantics = [#tpu.dimension_semantics<parallel>], iteration_bounds = array<i64: 2>, scalar_prefetch = 0 : i64, scratch_operands = 0 : i64, tpu.core_type = #tpu.core_type<tc>, window_params = [{transform_indices = @transform_0, window_bounds = array<i64: 1, 8, 32>}, {pipeline_mode = #tpu.pipeline_mode<synchronous>, transform_indices = @transform_1, window_bounds = array<i64: 32, 96>}, {pipeline_mode = #tpu.pipeline_mode<synchronous>, transform_indices = @transform_2, window_bounds = array<i64: 1, 96>}, {transform_indices = @transform_3, window_bounds = array<i64: 1, 8, 96>}]} {
    %c0 = arith.constant 0 : index
    %c0_0 = arith.constant 0 : index
    %c0_1 = arith.constant 0 : index
    %0 = vector.load %arg1[%c0, %c0_0, %c0_1] : memref<1x8x32xf32, #tpu.memory_space<vmem>>, vector<1x8x32xf32>
    %1 = vector.shape_cast %0 : vector<1x8x32xf32> to vector<8x32xf32>
    %2 = arith.truncf %1 : vector<8x32xf32> to vector<8x32xbf16>
    %c0_2 = arith.constant 0 : index
    %c0_3 = arith.constant 0 : index
    %3 = vector.load %arg2[%c0_2, %c0_3] : memref<32x96xbf16, #tpu.memory_space<vmem>>, vector<32x96xbf16>
    %cst = arith.constant dense<0.000000e+00> : vector<8x96xf32>
    %4 = tpu.matmul %2, %3, %cst {dimension_numbers = #tpu.dot_dimension_numbers<[1], [0], [0], [1], [0, 0, 1, 1], [], []>} : vector<8x32xbf16>, vector<32x96xbf16>, vector<8x96xf32> -> vector<8x96xf32>
    %c0_4 = arith.constant 0 : index
    %c0_5 = arith.constant 0 : index
    %5 = vector.load %arg3[%c0_4, %c0_5] : memref<1x96xf32, #tpu.memory_space<vmem>>, vector<1x96xf32>
    %6 = vector.broadcast %5 : vector<1x96xf32> to vector<8x96xf32>
    %7 = arith.addf %4, %6 : vector<8x96xf32>
    %8 = arith.truncf %7 : vector<8x96xf32> to vector<8x96xbf16>
    %c0_6 = arith.constant 0 : index
    %c0_7 = arith.constant 0 : index
    %c0_8 = arith.constant 0 : index
    %9 = vector.load %arg4[%c0_6, %c0_7, %c0_8] : memref<1x8x96xbf16, #tpu.memory_space<vmem>>, vector<1x8x96xbf16>
    %10 = vector.shape_cast %9 : vector<1x8x96xbf16> to vector<8x96xbf16>
    %11 = vector.shape_cast %8 : vector<8x96xbf16> to vector<1x8x96xbf16>
    tpu.vector_store %arg4[%c0_6, %c0_7, %c0_8], %11 {strides = array<i32>} : memref<1x8x96xbf16, #tpu.memory_space<vmem>>, vector<1x8x96xbf16>,
    return
  }
  func.func @transform_0(%arg0: i32) -> (i32, i32, i32) {
    %c0_i32 = arith.constant 0 : i32
    %c0_i32_0 = arith.constant 0 : i32
    %c0_i32_1 = arith.constant 0 : i32
    return %arg0, %c0_i32, %c0_i32_0 : i32, i32, i32
  }
  func.func @transform_1(%arg0: i32) -> (i32, i32) {
    %c0_i32 = arith.constant 0 : i32
    %c0_i32_0 = arith.constant 0 : i32
    %c0_i32_1 = arith.constant 0 : i32
    return %c0_i32, %c0_i32_0 : i32, i32
  }
  func.func @transform_2(%arg0: i32) -> (i32, i32) {
    %c0_i32 = arith.constant 0 : i32
    %c0_i32_0 = arith.constant 0 : i32
    %c0_i32_1 = arith.constant 0 : i32
    return %c0_i32, %c0_i32_0 : i32, i32
  }
  func.func @transform_3(%arg0: i32) -> (i32, i32, i32) {
    %c0_i32 = arith.constant 0 : i32
    %c0_i32_0 = arith.constant 0 : i32
    %c0_i32_1 = arith.constant 0 : i32
    return %arg0, %c0_i32, %c0_i32_0 : i32, i32, i32
  }
}

</mosaic_0001>

<bundles_post_ra>
// kernel: tpu_custom_call.1
= control target key start
LH: loop header
LB: loop body
LE: loop exit
PB: predicated region body
PF: predicated region fallthrough
CT: control target
= control target key end

     0   :  { %8 = vsyncpa [#allocation3], 0  ;;  %s781_s0 = inlined_call_operand.hbm [shape: f32[2,8,32], index: 0, kind: input, shape index: {}]   ;;  %s782_s1 = inlined_call_operand.hbm [shape: bf16[32,96], index: 1, kind: input, shape index: {}]   ;;  %s783_s2 = inlined_call_operand.vmem [shape: f32[1,96], index: 2, kind: input, shape index: {}]   ;;  %s784_s3 = inlined_call_operand.hbm [shape: bf16[2,8,96], index: 3, kind: output, shape index: {}]  }
   0x1   :  { %10 = vsyncpa [#allocation3 + $0x1], 0 }
   0x2   :  { %11 = vsyncpa [#allocation6], 0 }
   0x3   :  { %12 = vsyncpa [#allocation4], 0 }
   0x4   :  { %14 = vsyncpa [#allocation4 + $0x1], 0  ;;  %s611_s12 = smov 0   ;;  %s613_s13 = smov 0  }
   0x5   :  { %s615_s14 = smov 0   ;;  %s617_s15 = smov 0  }
   0x6 LB: > { %s632_s16 = sadd.s32 4294967295, %s582_s15   ;;  %s368_s17 = sadd.s32 4294967294, %s582_s15   ;;  %s582_s15 = sphi %s617_s15, %s806_s15   ;;  %s578_s14 = sphi %s615_s14, %s805_s14   ;;  %s574_s13 = sphi %s613_s13, %s804_s13   ;;  %s570_s12 = sphi %s611_s12, %s803_s12  }
   0x7   : > { %p40_p0 = scmp.ne.s32.totalorder %s574_s13, %s570_s12  ;;  %p785_p1 = scmp.eq.s32.totalorder %s632_s16, 0 }
   0x8   : > { %p112_p3 = scmp.eq.s32.totalorder %s368_s17, 1  ;;  %p369_p5 = scmp.ge.s32.totalorder %s582_s15, 1 }
   0x9   : > { %p641_p4 = por %p785_p1, %p40_p0  ;;  %p119_p7 = scmp.lt.s32.totalorder %s582_s15, 3 }
   0xa   : > { %p646_p6 = por %p112_p3, %p40_p0  ;;  %s584_s21 = smov [#allocation5]  }
   0xb   : > { %s789_s18 = scalar_select %p641_p4, 1, 0 }
   0xc   : > { %s790_s19 = scalar_select %p646_p6, 1, 0 }
   0xd   : > { %p651_p8 = pnand %p369_p5, %p119_p7  ;;  %s131_s22 = sshll.u32 %s584_s21, 4  ;;  %s132_s22 = int_to_ptr.vmem [resolvable:$true] %s131_s22 }
   0xe   : > { %s665_s24 = sadd.s32 1, %s582_s15   ;;  %s27_s25 = sadd.s32 1, %s578_s14 }
   0xf   : > { %s791_s20 = scalar_select %p651_p8, 1, 0 }
  0x10   : > { %p405_p9 = pneg %p651_p8  ;;  %s24_s26 = ssub.s32 %s582_s15, %s665_s24 }
  0x11   : > { %s471_s27 = scalar_lea.vmem %s132_s22, 256  ;;  %p479_p5 = scmp.lt.s32.totalorder %s132_s22, %s132_s22 }
  0x12   : > { %p660_p11 = pnand %p405_p9, %p785_p1  ;;  %p472_p13 = scmp.ne.s32.totalorder %s132_s22, %s471_s27 }
  0x13   : > { %p480_p7 = scmp.lt.s32.totalorder %s471_s27, %s471_s27 }
  0x14   : > { %p462_p12 = pneg %p660_p11 }
  0x15   : > { %p481_p10 = por %p480_p7, %p479_p5 }
  0x16   : > { %p474_p0 = pnand %p472_p13, %p462_p12 }
  0x18   : > { %p475_p3 = pneg %p474_p0 }
  0x1a   : > { %p482_p2 = pnand %p481_p10, %p475_p3 }
  0x1c   : > { %485 = shalt.err (!%p482_p2)
}
  0x1d   : > { %s585_s28 = smov 64   ;;  %s586_s29 = smov 4  }
  0x1e   : > { %408 = dma.hbm_to_vmem [thread:$0]  (!%p660_p11), %s782_s1, 256, %s132_s22, [#allocation6], %s585_s28, %s585_s28, %s586_s29  }
  0x1f   : > { %p25_p9 = scmp.eq.s32.totalorder %s24_s26, 0  ;;  %p34_p12 = scmp.ne.s32.totalorder %s578_s14, %s574_s13 }
  0x20   : > { %p35_p10 = scmp.eq.s32.totalorder %s582_s15, 0  ;;  %p418_p2 = scmp.lt.s32.totalorder %s582_s15, 2 }
  0x21   : > { %s682_s5 = scalar_select %p25_p9, %s578_s14, %s27_s25  }
  0x22   : > { %p36_p13 = por %p35_p10, %p34_p12  ;;  %p793_p0 = scmp.eq.s32.totalorder %s632_s16, 1 }
  0x23   : > { %s148_s7 = sand.u32 1, %s578_s14   ;;  %s373_s8 = sshll.u32 %s582_s15, 7 }
  0x24   : > { %p686_p3 = por %p793_p0, %p34_p12  ;;  %s372_s9 = sshll.u32 %s148_s7, 3 }
  0x25   : > { %s695_s17 = scalar_lea.hbm %s781_s0, %s373_s8  ;;  %s152_s21 = scalar_lea.vmem [#allocation2], %s372_s9 }
  0x26   : > { %s794_s6 = scalar_select %p686_p3, 1, 0 }
  0x27   : > { %s159_s22 = sshll.u32 %s152_s21, 4  ;;  %p697_p11 = pnand %p418_p2, %p36_p13  ;;  %s160_s22 = int_to_ptr.vmem [resolvable:$true] %s159_s22 }
  0x28   : > { %s149_s25 = scalar_lea.sflag [#allocation3], %s148_s7  ;;  %s486_s26 = scalar_lea.hbm %s695_s17, 128 }
  0x29   : > { %p487_p5 = scmp.ne.s32.totalorder %s695_s17, %s486_s26  ;;  %p488_p7 = pneg %p697_p11 }
  0x2a   : > { %s491_s29 = scalar_lea.hbm %s781_s0, 256  ;;  %p492_p10 = scmp.lt.s32.totalorder %s695_s17, %s781_s0 }
  0x2b   : > { %p489_p9 = pnand %p488_p7, %p487_p5  ;;  %p493_p2 = scmp.lt.s32.totalorder %s491_s29, %s486_s26 }
  0x2d   : > { %p490_p12 = pneg %p489_p9  ;;  %p494_p13 = por %p493_p2, %p492_p10 }
  0x2f   : > { %p495_p0 = pnand %p494_p13, %p490_p12 }
  0x31   : > { %498 = shalt.err (!%p495_p0)
}
  0x32   : > { %s499_s8 = scalar_lea.vmem %s160_s22, 128  ;;  %s587_s7 = smov [#allocation2]  }
  0x33   : > { %p500_p1 = scmp.ne.s32.totalorder %s160_s22, %s499_s8  ;;  %s504_s9 = sshll.u32 %s587_s7, 4  ;;  %s505_s9 = int_to_ptr.vmem [resolvable:$false] %s504_s9 }
  0x34   : > { %s506_s10 = scalar_lea.vmem %s505_s9, 256  ;;  %p507_p5 = scmp.lt.s32.totalorder %s160_s22, %s505_s9 }
  0x35   : > { %p502_p6 = pnand %p500_p1, %p488_p7  ;;  %p508_p9 = scmp.lt.s32.totalorder %s506_s10, %s499_s8 }
  0x37   : > { %p503_p3 = pneg %p502_p6  ;;  %p509_p4 = por %p508_p9, %p507_p5 }
  0x39   : > { %p510_p8 = pnand %p509_p4, %p503_p3 }
  0x3b   : > { %513 = shalt.err (!%p510_p8)
}
  0x3c   : > { %412 = dma.hbm_to_vmem [thread:$0]  (!%p697_p11), %s695_s17, 128, %s160_s22, %s149_s25  }
  0x3d   : > { %p796_p12 = scmp.ne.s32.totalorder %s791_s20, 0 }
  0x3e   : > { %s718_s11 = sand.u32 (!%p796_p12), 1, %s574_s13   ;;  %p797_p1 = scmp.ne.s32.totalorder (!%p796_p12), %s789_s18, 0 }
  0x3f   : > { %168 = sbr.rel (%p796_p12) target bundleno = 292 (0x124), region = 32  ;;  %s375_s21 = sshll.u32 (!%p796_p12), %s718_s11, 3 }
  0x40   : > { %s171_s26 = scalar_lea.sflag (!%p796_p12), [#allocation3], %s718_s11  ;;  %s174_s27 = scalar_lea.vmem (!%p796_p12), [#allocation2], %s375_s21 }
  0x44   : > { %557 = dma.done.wait (%p797_p1), %s171_s26, 128  }
  0x45   : > { %559 = vsyncadd (%p797_p1), %s171_s26, 4294967168  ;;  %p798_p4 = scmp.eq.s32.totalorder %s632_s16, 0 }
  0x47   : > { %561 = dma.done.wait (%p798_p4), [#allocation6], 256   ;;  %p799_p6 = pmov %p798_p4 }
  0x48   : > { %v588_v0 = vmov 0.0   ;;  %vm589_vm0 = vmmov 0   ;;  %v458_v1 = vld [vmem:[#allocation5 + $0x8] sm:$0xff]   ;;  %v459_v2 = vld [vmem:[#allocation5] sm:$0xff]   ;;  %v202_v3 = vld [vmem:[%s174_s27] sm:$0xff]  ;;  %vm227_vm1 = vcmask 261120  }
  0x49   : > { %563 = vsyncadd (%p799_p6), [#allocation6], 4294967040  ;;  %389 = vmatprep.subr.bf16.mxu0 %v588_v0  ;;  %393 = vmatprep.mubr.msk.bf16.mxu0 %vm589_vm0, %v588_v0  ;;  %v203_v4 = vpack.c.bf16 %v202_v3, %v202_v3  ;;  %s377_s18 = sshll.u32 %s718_s11, 2  ;;  %v378_v5 = vld [vmem:[%s783_s2] ss:$0 sm:$0xff]  ;;  %s383_s22 = sshll.u32 %s632_s16, 6 }
  0x4a   : > { %390 = vmatpush3.bf16.msra.mxu0 %v458_v1  ;;  %s200_s23 = scalar_lea.vmem [#allocation7], %s377_s18  ;;  %vm272_vm2 = vcmask 781312   ;;  %s738_s30 = scalar_lea.hbm %s784_s3, %s383_s22 }
  0x4b   : > { %391 = vmatprep.subr.bf16.mxu0 %v588_v0  ;;  %s288_s25 = sshll.u32 %s200_s23, 4  ;;  %s275_s16 = scalar_lea.sflag [#allocation4], %s718_s11  ;;  %s740_s25 = int_to_ptr.vmem [resolvable:$true] %s288_s25 }
  0x4c   : > { %s514_s4 = scalar_lea.vmem %s740_s25, 64  ;;  %p800_p3 = scmp.ne.s32.totalorder %s794_s6, 0 }
  0x4d   : > { %p515_p8 = scmp.ne.s32.totalorder %s740_s25, %s514_s4  ;;  %s590_s8 = smov [#allocation7]  }
  0x4e   : > { %392 = vmatpush3.bf16.msra.mxu0 %v459_v2  ;;  %s518_s7 = sshll.u32 %s590_s8, 4  ;;  %s519_s7 = int_to_ptr.vmem [resolvable:$false] %s518_s7 }
  0x4f   : > { %p516_p11 = pnand %p515_p8, %p800_p3  ;;  %s520_s9 = scalar_lea.vmem %s519_s7, 128 }
  0x50   : > { %p521_p10 = scmp.lt.s32.totalorder %s740_s25, %s519_s7  ;;  %p522_p2 = scmp.lt.s32.totalorder %s520_s9, %s514_s4 }
  0x51   : > { %394 = vmatmul.mubr.msk.bf16.vlgmr.msra.gmra.mxu0 %vm227_vm1, %v203_v4  ;;  %p517_p7 = pneg %p516_p11 }
  0x52   : > { %p523_p13 = por %p522_p2, %p521_p10 }
  0x54   : > { %p524_p0 = pnand %p523_p13, %p517_p7 }
 0x111   : > { %v265_v6 = vpop.f32.mrf.mxu0 }
 0x112   : > { %v266_v7 = vadd.f32 %v378_v5, %v265_v6 }
 0x113   : > { %v395_v8 = vpop.f32.mrf.mxu0 }
 0x114   : > { %v271_v9 = vpack.c.bf16 %v266_v7, %v266_v7 }
 0x115   : > { %v268_v10 = vpop.f32.mrf.mxu0 }
 0x116   : > { %273 = vst.msk [vmem:[%s200_s23] sm:$0xf] %vm272_vm2, %v271_v9 }
 0x117   : > { %v396_v11 = vpop.f32.mrf.mxu0 }
 0x118   : > { %527 = shalt.err (!%p524_p0)
}
 0x119   : > { %s528_s10 = scalar_lea.hbm %s738_s30, 64  ;;  %s532_s26 = scalar_lea.hbm %s784_s3, 128 }
 0x11a   : > { %p529_p5 = scmp.ne.s32.totalorder %s738_s30, %s528_s10  ;;  %p533_p1 = scmp.lt.s32.totalorder %s738_s30, %s784_s3 }
 0x11b   : > { %p534_p4 = scmp.lt.s32.totalorder %s532_s26, %s528_s10 }
 0x11c   : > { %p530_p9 = pnand %p529_p5, %p800_p3 }
 0x11d   : > { %p535_p6 = por %p534_p4, %p533_p1 }
 0x11e   : > { %p531_p12 = pneg %p530_p9 }
 0x120   : > { %p536_p8 = pnand %p535_p6, %p531_p12 }
 0x122   : > { %539 = shalt.err (!%p536_p8)
}
 0x123   : > { %403 = dma.vmem_to_hbm [thread:$0]  (%p800_p3), %s740_s25, 64, %s738_s30, %s275_s16  }
 0x124 PF: > { %s300_s20 = sand.u32 1, %s570_s12   ;;  %p801_p11 = scmp.ne.s32.totalorder %s790_s19, 0 }
 0x125   : > { %p802_p7 = scmp.ge.s32.totalorder %s582_s15, 2  ;;  %s301_s17 = scalar_lea.sflag [#allocation4], %s300_s20 }
 0x127   : > { %p414_p10 = pnand %p802_p7, %p801_p11 }
 0x129   : > { %p415_p2 = pneg %p414_p10 }
 0x12b   : > { %565 = dma.done.wait (%p415_p2), %s301_s17, 64  }
 0x12c   : > { %567 = vsyncadd (%p415_p2), %s301_s17, 4294967232  ;;  %p17_p13 = scmp.ge.s32.totalorder %s665_s24, 4   ;;  %s803_s12 = smov %s574_s13 }
 0x12d   : > { %s804_s13 = smov %s578_s14  ;;  %s805_s14 = smov %s682_s5 }
 0x12e   : > { %s806_s15 = smov %s665_s24  ;;  %19 = sbr.rel (!%p17_p13) target bundleno = 6 (0x6), region = 81 }
 0x133   :  { %306 = vsyncpa [#allocation3], 1 }
 0x134   :  { %308 = vsyncpa [#allocation3 + $0x1], 1 }
 0x135   :  { %309 = vsyncpa [#allocation6], 1 }
 0x136   :  { %310 = vsyncpa [#allocation4], 1 }
 0x137   :  { %312 = vsyncpa [#allocation4 + $0x1], 1 }

</bundles_post_ra>
